<compile_context>
chip_gen: v5e
topology: v5e:2x2
jax: 0.10.0
libtpu: 0.0.40
codegen_flags: <defaults>
</compile_context>

<pallas_src>
import math

import numpy as np
import jax
import jax.numpy as jnp
from jax.experimental import pallas as pl
from jax.experimental.pallas import tpu as pltpu


# ----------------------------- configuration -------------------------------
HIDDEN = 32                              # config.hidden_size
NUM_HEADS = 4                            # config.num_heads
NUM_GROUPS = 2                           # config.num_query_groups
HEAD_DIM = HIDDEN // NUM_HEADS           # 8
KV_DIM = NUM_GROUPS * HEAD_DIM           # k/v projection width = 16
BATCH = 2
SEQ = 8

PACK = 128 // HIDDEN                     # tokens packed per 128-lane row (4)
PW = PACK * HIDDEN                       # packed row width = 128
FUSED_OUT = 4 * PW                       # q | kdiff | vdiff | v1  -> 512
MAX_TM = 1024                            # max packed rows per grid step


# ------------------------------- kernel ------------------------------------
def gqa_kernel(x_ref, wf_ref, bf_ref, p_ref, wo_ref, bo_ref, o_ref):
    """Fused GQA forward for one tile of TM packed rows (TM*PACK tokens).

    x_ref  : (TM, 128)  f32   4 tokens per row, lane-dense
    wf_ref : (128, 512) bf16  block-diag [Wq | Wkdiff*scale | Wvdiff | Wv1]
    bf_ref : (1, 512)   f32   fused biases
    p_ref  : (128, 128) bf16  block-diag per-head sum+broadcast projector
    wo_ref : (128, 128) bf16  block-diag Wo^T
    bo_ref : (1, 128)   f32
    o_ref  : (TM, 128)  f32
    """
    x = x_ref[...].astype(jnp.bfloat16)

    # One fused projection matmul: q | kdiff | vdiff | v1 (all packed, K=128).
    fused = jnp.dot(x, wf_ref[...], preferred_element_type=jnp.float32) + bf_ref[...]
    q     = fused[:, 0 * PW:1 * PW]
    kdiff = fused[:, 1 * PW:2 * PW]      # (k_g0 - k_g1) tiled, 1/sqrt(D) folded in
    vdiff = fused[:, 2 * PW:3 * PW]      # (v_g0 - v_g1) tiled
    v1    = fused[:, 3 * PW:4 * PW]      # v_g1 tiled

    # Per-head score difference: projector sums each 8-lane head block and
    # broadcasts it back across the block.
    sdiff = jnp.dot((q * kdiff).astype(jnp.bfloat16), p_ref[...],
                    preferred_element_type=jnp.float32)

    # TODO(synk): optional attention_mask add not wired in (module called with mask=None).

    # Softmax over the 2 query groups == sigmoid of the score difference.
    # EUP exp + EUP approx reciprocal (denominator >= 1, so approx is safe).
    p0 = pl.reciprocal(1.0 + jnp.exp(-sdiff), approx=True)
    ctx = v1 + p0 * vdiff                # == p0*v0 + (1-p0)*v1

    # dropout(p) is identity in eval mode.

    o_ref[...] = jnp.dot(ctx.astype(jnp.bfloat16), wo_ref[...],
                         preferred_element_type=jnp.float32) + bo_ref[...]


# ------------------- constant folding (host-side, once) ---------------------
def _np_block_diag(w):
    """(din, dout) -> (PACK*din, PACK*dout) block-diagonal replication."""
    din, dout = w.shape
    bd = np.zeros((PACK * din, PACK * dout), w.dtype)
    for p in range(PACK):
        bd[p * din:(p + 1) * din, p * dout:(p + 1) * dout] = w
    return bd


def _np_group_tiling(g):
    """(KV_DIM, HIDDEN) 0/1 matrix tiling group-g's head_dim slice across every head."""
    t = np.zeros((KV_DIM, HIDDEN), np.float32)
    d = np.arange(HEAD_DIM)
    for h in range(NUM_HEADS):
        t[g * HEAD_DIM + d, h * HEAD_DIM + d] = 1.0
    return t


def _np_head_projector():
    """(HIDDEN, HIDDEN) P with P[i,j] = 1 iff i and j lie in the same head block."""
    idx = np.arange(HIDDEN) // HEAD_DIM
    return (idx[:, None] == idx[None, :]).astype(np.float32)


def build_gqa_consts(params):
    """Fold group tiling, group-difference and 1/sqrt(D) into the weights.

    Built once per parameter set with numpy (no per-call .at[].set chains).
    MXU operands are stored in bfloat16; biases stay f32 (added post-accum).
    """
    p = {k: np.asarray(v, np.float32) for k, v in params.items()}
    wq_t, wk_t, wv_t, wo_t = p["wq"].T, p["wk"].T, p["wv"].T, p["wo"].T
    t0, t1 = _np_group_tiling(0), _np_group_tiling(1)
    tdiff = t0 - t1
    inv_sqrt_d = 1.0 / math.sqrt(HEAD_DIM)

    kdiff_w = (wk_t @ tdiff) * inv_sqrt_d          # scale folded in
    kdiff_b = (p["bk"] @ tdiff) * inv_sqrt_d
    vdiff_w = wv_t @ tdiff
    vdiff_b = p["bv"] @ tdiff
    v1_w = wv_t @ t1
    v1_b = p["bv"] @ t1

    w_fused = np.concatenate(
        [_np_block_diag(wq_t), _np_block_diag(kdiff_w),
         _np_block_diag(vdiff_w), _np_block_diag(v1_w)], axis=1)       # (128, 512)
    b_fused = np.concatenate(
        [np.tile(p["bq"], PACK), np.tile(kdiff_b, PACK),
         np.tile(vdiff_b, PACK), np.tile(v1_b, PACK)]).reshape(1, FUSED_OUT)

    return dict(
        w_fused=jnp.asarray(w_fused, jnp.bfloat16),
        b_fused=jnp.asarray(b_fused, jnp.float32),
        p_bd=jnp.asarray(_np_block_diag(_np_head_projector()), jnp.bfloat16),
        wo_bd=jnp.asarray(_np_block_diag(wo_t), jnp.bfloat16),
        bo=jnp.asarray(np.tile(p["bo"], PACK).reshape(1, PW), jnp.float32),
    )


# ------------------------------ wrapper -------------------------------------
def _round_up(a, b):
    return -(-a // b) * b


@jax.jit
def gqa_forward(hidden_states, consts):
    """hidden_states: (B, S, HIDDEN) float32 -> (B, S, HIDDEN) float32."""
    B, S, H = hidden_states.shape
    N = B * S
    x2d = hidden_states.reshape(N, H)

    # Pack PACK tokens per 128-lane row.  Pad only up to a multiple of
    # PACK*8 = 32 tokens so the packed rows fill whole (8,128) tiles; no
    # padding up to a row-tile multiple (Pallas masks the partial last block).
    n_tok_pad = _round_up(N, PACK * 8)
    if n_tok_pad != N:
        x2d = jnp.pad(x2d, ((0, n_tok_pad - N), (0, 0)))
    n_rows = n_tok_pad // PACK
    xp = x2d.reshape(n_rows, PW)

    # Row tile: big tiles amortize the ~0.35us per-grid-step cost; aim for
    # >= 2 grid steps when the input is big enough so v7x megacore can split
    # the "parallel" axis across both TensorCores.
    tm = min(MAX_TM, max(8, _round_up(-(-n_rows // 2), 8)))
    grid = (pl.cdiv(n_rows, tm),)

    const2d = lambda i: (0, 0)
    # NOTE: constant-index_map operands are small (~200 KB total in bf16);
    # Mosaic elides their re-fetch across grid steps, so no pipeline_mode
    # override is needed.
    out_p = pl.pallas_call(
        gqa_kernel,
        out_shape=jax.ShapeDtypeStruct((n_rows, PW), jnp.float32),
        grid=grid,
        in_specs=[
            pl.BlockSpec((tm, PW), lambda i: (i, 0)),            # packed x tile
            pl.BlockSpec((PW, FUSED_OUT), const2d),              # fused projection
            pl.BlockSpec((1, FUSED_OUT), const2d),               # fused bias
            pl.BlockSpec((PW, PW), const2d),                     # head projector
            pl.BlockSpec((PW, PW), const2d),                     # Wo^T (block-diag)
            pl.BlockSpec((1, PW), const2d),                      # bo
        ],
        out_specs=pl.BlockSpec((tm, PW), lambda i: (i, 0)),
        compiler_params=pltpu.CompilerParams(
            dimension_semantics=("parallel",),
            vmem_limit_bytes=32 * 1024 * 1024),
    )(xp, consts["w_fused"], consts["b_fused"], consts["p_bd"],
      consts["wo_bd"], consts["bo"])

    out = out_p.reshape(n_tok_pad, H)[:N]
    return out.reshape(B, S, H)


# --------------------------- pure-JAX reference ------------------------------
def gqa_reference(hidden_states, params):
    B, S, H = hidden_states.shape
    q = hidden_states @ params["wq"].T + params["bq"]
    k = hidden_states @ params["wk"].T + params["bk"]
    v = hidden_states @ params["wv"].T + params["bv"]
    q = q.reshape(B, S, NUM_HEADS, HEAD_DIM)
    k = k.reshape(B, S, NUM_GROUPS, HEAD_DIM)
    v = v.reshape(B, S, NUM_GROUPS, HEAD_DIM)
    scores = jnp.einsum("bsnd,bsgd->bsng", q, k) / math.sqrt(HEAD_DIM)
    probs = jax.nn.softmax(scores, axis=-1)
    out = jnp.einsum("bsng,bsgd->bsnd", probs, v).reshape(B, S, H)
    return out @ params["wo"].T + params["bo"]


# --------------------------------- main --------------------------------------
def init_params(key):
    ks = jax.random.split(key, 8)
    scale = 0.05
    return {
        "wq": scale * jax.random.normal(ks[0], (HIDDEN, HIDDEN), jnp.float32),
        "bq": scale * jax.random.normal(ks[1], (HIDDEN,), jnp.float32),
        "wk": scale * jax.random.normal(ks[2], (KV_DIM, HIDDEN), jnp.float32),
        "bk": scale * jax.random.normal(ks[3], (KV_DIM,), jnp.float32),
        "wv": scale * jax.random.normal(ks[4], (KV_DIM, HIDDEN), jnp.float32),
        "bv": scale * jax.random.normal(ks[5], (KV_DIM,), jnp.float32),
        "wo": scale * jax.random.normal(ks[6], (HIDDEN, HIDDEN), jnp.float32),
        "bo": scale * jax.random.normal(ks[7], (HIDDEN,), jnp.float32),
    }


if __name__ == "__main__":
    key = jax.random.PRNGKey(0)
    k_x, k_p = jax.random.split(key)
    hidden_states = jax.random.normal(k_x, (BATCH, SEQ, HIDDEN), jnp.float32)
    params = init_params(k_p)

    consts = build_gqa_consts(params)          # built once, outside the jit

    out = gqa_forward(hidden_states, consts)
    out = jax.block_until_ready(out)

    ref = gqa_reference(hidden_states, params)
    assert out.shape == (BATCH, SEQ, HIDDEN)
    # bf16 MXU operands + EUP approx reciprocal stack a little extra error on
    # top of the exact f32 reference; tolerance loosened accordingly.
    err = jnp.max(jnp.abs(out - ref))
    assert jnp.allclose(out, ref, atol=2e-3, rtol=2e-2), f"max abs err {err}"

    print("KERNEL_OK")
</pallas_src>

<mosaic_0001>
module attributes {stable_mosaic.version = 11 : i64} {
  func.func @gqa_kernel(%arg0: i32, %arg1: memref<8x128xf32, #tpu.memory_space<vmem>>, %arg2: memref<128x512xbf16, #tpu.memory_space<vmem>>, %arg3: memref<1x512xf32, #tpu.memory_space<vmem>>, %arg4: memref<128x128xbf16, #tpu.memory_space<vmem>>, %arg5: memref<128x128xbf16, #tpu.memory_space<vmem>>, %arg6: memref<1x128xf32, #tpu.memory_space<vmem>>, %arg7: memref<8x128xf32, #tpu.memory_space<vmem>>) attributes {dimension_semantics = [#tpu.dimension_semantics<parallel>], iteration_bounds = array<i64: 1>, scalar_prefetch = 0 : i64, scratch_operands = 0 : i64, tpu.core_type = #tpu.core_type<tc>, window_params = [{transform_indices = @transform_0, window_bounds = array<i64: 8, 128>}, {pipeline_mode = #tpu.pipeline_mode<synchronous>, transform_indices = @transform_1, window_bounds = array<i64: 128, 512>}, {pipeline_mode = #tpu.pipeline_mode<synchronous>, transform_indices = @transform_2, window_bounds = array<i64: 1, 512>}, {pipeline_mode = #tpu.pipeline_mode<synchronous>, transform_indices = @transform_3, window_bounds = array<i64: 128, 128>}, {pipeline_mode = #tpu.pipeline_mode<synchronous>, transform_indices = @transform_4, window_bounds = array<i64: 128, 128>}, {pipeline_mode = #tpu.pipeline_mode<synchronous>, transform_indices = @transform_5, window_bounds = array<i64: 1, 128>}, {transform_indices = @transform_6, window_bounds = array<i64: 8, 128>}]} {
    %c0 = arith.constant 0 : index
    %c0_0 = arith.constant 0 : index
    %0 = vector.load %arg1[%c0, %c0_0] : memref<8x128xf32, #tpu.memory_space<vmem>>, vector<8x128xf32>
    %1 = arith.truncf %0 : vector<8x128xf32> to vector<8x128xbf16>
    %c0_1 = arith.constant 0 : index
    %c0_2 = arith.constant 0 : index
    %2 = vector.load %arg2[%c0_1, %c0_2] : memref<128x512xbf16, #tpu.memory_space<vmem>>, vector<128x512xbf16>
    %cst = arith.constant dense<0.000000e+00> : vector<8x512xf32>
    %3 = tpu.matmul %1, %2, %cst {dimension_numbers = #tpu.dot_dimension_numbers<[1], [0], [0], [1], [0, 0, 1, 1], [], []>} : vector<8x128xbf16>, vector<128x512xbf16>, vector<8x512xf32> -> vector<8x512xf32>
    %c0_3 = arith.constant 0 : index
    %c0_4 = arith.constant 0 : index
    %4 = vector.load %arg3[%c0_3, %c0_4] : memref<1x512xf32, #tpu.memory_space<vmem>>, vector<1x512xf32>
    %5 = vector.broadcast %4 : vector<1x512xf32> to vector<8x512xf32>
    %6 = arith.addf %3, %5 : vector<8x512xf32>
    %7 = vector.extract_strided_slice %6 {offsets = [0, 0], sizes = [8, 128], strides = [1, 1]} : vector<8x512xf32> to vector<8x128xf32>
    %8 = vector.extract_strided_slice %6 {offsets = [0, 128], sizes = [8, 128], strides = [1, 1]} : vector<8x512xf32> to vector<8x128xf32>
    %9 = vector.extract_strided_slice %6 {offsets = [0, 256], sizes = [8, 128], strides = [1, 1]} : vector<8x512xf32> to vector<8x128xf32>
    %10 = vector.extract_strided_slice %6 {offsets = [0, 384], sizes = [8, 128], strides = [1, 1]} : vector<8x512xf32> to vector<8x128xf32>
    %11 = arith.mulf %7, %8 : vector<8x128xf32>
    %12 = arith.truncf %11 : vector<8x128xf32> to vector<8x128xbf16>
    %c0_5 = arith.constant 0 : index
    %c0_6 = arith.constant 0 : index
    %13 = vector.load %arg4[%c0_5, %c0_6] : memref<128x128xbf16, #tpu.memory_space<vmem>>, vector<128x128xbf16>
    %cst_7 = arith.constant dense<0.000000e+00> : vector<8x128xf32>
    %14 = tpu.matmul %12, %13, %cst_7 {dimension_numbers = #tpu.dot_dimension_numbers<[1], [0], [0], [1], [0, 0, 1, 1], [], []>} : vector<8x128xbf16>, vector<128x128xbf16>, vector<8x128xf32> -> vector<8x128xf32>
    %cst_8 = arith.constant 0.000000e+00 : f32
    %15 = vector.broadcast %cst_8 : f32 to vector<8x128xf32>
    %16 = arith.subf %15, %14 : vector<8x128xf32>
    %17 = math.exp %16 : vector<8x128xf32>
    %cst_9 = arith.constant 1.000000e+00 : f32
    %18 = vector.broadcast %cst_9 : f32 to vector<8x128xf32>
    %19 = arith.addf %18, %17 : vector<8x128xf32>
    %20 = tpu.reciprocal %19 {approx = true} : vector<8x128xf32> -> vector<8x128xf32>
    %21 = arith.mulf %20, %9 : vector<8x128xf32>
    %22 = arith.addf %10, %21 : vector<8x128xf32>
    %23 = arith.truncf %22 : vector<8x128xf32> to vector<8x128xbf16>
    %c0_10 = arith.constant 0 : index
    %c0_11 = arith.constant 0 : index
    %24 = vector.load %arg5[%c0_10, %c0_11] : memref<128x128xbf16, #tpu.memory_space<vmem>>, vector<128x128xbf16>
    %cst_12 = arith.constant dense<0.000000e+00> : vector<8x128xf32>
    %25 = tpu.matmul %23, %24, %cst_12 {dimension_numbers = #tpu.dot_dimension_numbers<[1], [0], [0], [1], [0, 0, 1, 1], [], []>} : vector<8x128xbf16>, vector<128x128xbf16>, vector<8x128xf32> -> vector<8x128xf32>
    %c0_13 = arith.constant 0 : index
    %c0_14 = arith.constant 0 : index
    %26 = vector.load %arg6[%c0_13, %c0_14] : memref<1x128xf32, #tpu.memory_space<vmem>>, vector<1x128xf32>
    %27 = vector.broadcast %26 : vector<1x128xf32> to vector<8x128xf32>
    %28 = arith.addf %25, %27 : vector<8x128xf32>
    %c0_15 = arith.constant 0 : index
    %c0_16 = arith.constant 0 : index
    %29 = vector.load %arg7[%c0_15, %c0_16] : memref<8x128xf32, #tpu.memory_space<vmem>>, vector<8x128xf32>
    tpu.vector_store %arg7[%c0_15, %c0_16], %28 {strides = array<i32>} : memref<8x128xf32, #tpu.memory_space<vmem>>, vector<8x128xf32>,
    return
  }
  func.func @transform_0(%arg0: i32) -> (i32, i32) {
    %c0_i32 = arith.constant 0 : i32
    %c0_i32_0 = arith.constant 0 : i32
    return %arg0, %c0_i32 : i32, i32
  }
  func.func @transform_1(%arg0: i32) -> (i32, i32) {
    %c0_i32 = arith.constant 0 : i32
    %c0_i32_0 = arith.constant 0 : i32
    %c0_i32_1 = arith.constant 0 : i32
    return %c0_i32, %c0_i32_0 : i32, i32
  }
  func.func @transform_2(%arg0: i32) -> (i32, i32) {
    %c0_i32 = arith.constant 0 : i32
    %c0_i32_0 = arith.constant 0 : i32
    %c0_i32_1 = arith.constant 0 : i32
    return %c0_i32, %c0_i32_0 : i32, i32
  }
  func.func @transform_3(%arg0: i32) -> (i32, i32) {
    %c0_i32 = arith.constant 0 : i32
    %c0_i32_0 = arith.constant 0 : i32
    %c0_i32_1 = arith.constant 0 : i32
    return %c0_i32, %c0_i32_0 : i32, i32
  }
  func.func @transform_4(%arg0: i32) -> (i32, i32) {
    %c0_i32 = arith.constant 0 : i32
    %c0_i32_0 = arith.constant 0 : i32
    %c0_i32_1 = arith.constant 0 : i32
    return %c0_i32, %c0_i32_0 : i32, i32
  }
  func.func @transform_5(%arg0: i32) -> (i32, i32) {
    %c0_i32 = arith.constant 0 : i32
    %c0_i32_0 = arith.constant 0 : i32
    %c0_i32_1 = arith.constant 0 : i32
    return %c0_i32, %c0_i32_0 : i32, i32
  }
  func.func @transform_6(%arg0: i32) -> (i32, i32) {
    %c0_i32 = arith.constant 0 : i32
    %c0_i32_0 = arith.constant 0 : i32
    return %arg0, %c0_i32 : i32, i32
  }
}

</mosaic_0001>

<bundles_post_ra>
// kernel: gqa_forward.1
= control target key start
LH: loop header
LB: loop body
LE: loop exit
PB: predicated region body
PF: predicated region fallthrough
CT: control target
= control target key end

     0   :  { %11 = vsyncpa [#allocation3], 0  ;;  %s872_s0 = inlined_call_operand.vmem [shape: f32[8,128], index: 0, kind: input, shape index: {}]   ;;  %s873_s1 = inlined_call_operand.hbm [shape: bf16[128,512], index: 1, kind: input, shape index: {}]   ;;  %s874_s2 = inlined_call_operand.vmem [shape: f32[1,512], index: 2, kind: input, shape index: {}]   ;;  %s875_s3 = inlined_call_operand.vmem [shape: bf16[128,128], index: 3, kind: input, shape index: {}]   ;;  %s876_s4 = inlined_call_operand.hbm [shape: bf16[128,128], index: 4, kind: input, shape index: {}]   ;;  %s877_s5 = inlined_call_operand.vmem [shape: f32[1,128], index: 5, kind: input, shape index: {}]   ;;  %s878_s6 = inlined_call_operand.vmem [shape: f32[8,128], index: 6, kind: output, shape index: {}]  }
   0x1   :  { %s19_s23 = sshll.u32 %s873_s1, 4  ;;  %s20_s23 = int_to_ptr.hbm [resolvable:$true] %s19_s23 }
   0x2   :  { %12 = vsyncpa [#allocation5], 0  ;;  %s789_s24 = smov [#allocation2]   ;;  %s36_s28 = sshll.u32 %s876_s4, 4  ;;  %s37_s28 = int_to_ptr.hbm [resolvable:$true] %s36_s28 }
   0x3   :  { %s21_s25 = sshll.u32 %s789_s24, 4  ;;  %s790_s29 = smov 256   ;;  %s22_s25 = int_to_ptr.vmem [resolvable:$true] %s21_s25 }
   0x4   :  { %s791_s30 = smov 16   ;;  %s792_s7 = smov [#allocation4]  }
   0x5   :  { %27 = dma.hbm_to_vmem [thread:$0]  %s20_s23, 4096, %s22_s25, [#allocation3], %s790_s29, %s790_s29, %s791_s30  }
   0x6   :  { %s38_s8 = sshll.u32 %s792_s7, 4  ;;  %s793_s9 = smov 64   ;;  %s39_s8 = int_to_ptr.vmem [resolvable:$true] %s38_s8 }
   0x7   :  { %s794_s10 = smov 4  }
   0x8   :  { %44 = dma.hbm_to_vmem [thread:$0]  %s37_s28, 1024, %s39_s8, [#allocation5], %s793_s9, %s793_s9, %s794_s10  }
   0x9   :  { %785 = dma.done.wait [#allocation3], 4096  }
   0xa   :  { %786 = vsyncadd [#allocation3], 4294963200 }
   0xb   :  { %787 = dma.done.wait [#allocation5], 1024  }
   0xc   :  { %788 = vsyncadd [#allocation5], 4294966272  ;;  %v600_v0 = vld [vmem:[#allocation2 + $0xe0] sm:$0xf]  ;;  %v708_v1 = vld [vmem:[#allocation2 + $0xec] sm:$0xf0] }
   0xd   :  { %v706_v2 = vld [vmem:[#allocation2 + $0xe4] sm:$0xf]  ;;  %v601_v3 = vor.u32 %v708_v1, %v600_v0  ;;  %v602_v4 = vld [vmem:[#allocation2 + $0xf0] sm:$0xf0]  ;;  %v584_v5 = vld [vmem:[#allocation2 + $0xc0] sm:$0xf] }
   0xe   :  { %v704_v6 = vld [vmem:[#allocation2 + $0xcc] sm:$0xf0]  ;;  %v605_v7 = vor.u32 %v706_v2, %v602_v4  ;;  %v702_v8 = vld [vmem:[#allocation2 + $0xc4] sm:$0xf]  ;;  %v586_v9 = vld [vmem:[#allocation2 + $0xd0] sm:$0xf0] }
   0xf   :  { %259 = vmatpush.bf16.msra.mxu0 %v601_v3  ;;  %v585_v10 = vor.u32 %v704_v6, %v584_v5  ;;  %v589_v11 = vor.u32 %v702_v8, %v586_v9  ;;  %v568_v12 = vld [vmem:[#allocation2 + $0xa0] sm:$0xf]  ;;  %v700_v13 = vld [vmem:[#allocation2 + $0xac] sm:$0xf0]  ;;  %v698_v14 = vld [vmem:[#allocation2 + $0xa4] sm:$0xf] }
  0x10   :  { %272 = vmatpush.bf16.msra.mxu1 %v605_v7  ;;  %v570_v15 = vld [vmem:[#allocation2 + $0xb0] sm:$0xf0]  ;;  %v569_v16 = vor.u32 %v700_v13, %v568_v12  ;;  %v552_v18 = vld [vmem:[#allocation2 + $0x80] sm:$0xf]  ;;  %v696_v19 = vld [vmem:[#allocation2 + $0x8c] sm:$0xf0] }
  0x11   :  { %v573_v17 = vor.u32 %v698_v14, %v570_v15  ;;  %v694_v20 = vld [vmem:[#allocation2 + $0x84] sm:$0xf]  ;;  %v554_v21 = vld [vmem:[#allocation2 + $0x90] sm:$0xf0]  ;;  %v536_v22 = vld [vmem:[#allocation2 + $0x60] sm:$0xf]  ;;  %v553_v23 = vor.u32 %v696_v19, %v552_v18 }
  0x12   :  { %v692_v24 = vld [vmem:[#allocation2 + $0x6c] sm:$0xf0]  ;;  %v608_v25 = vld [vmem:[#allocation2 + $0xe8] sm:$0xf]  ;;  %v709_v26 = vld [vmem:[#allocation2 + $0xf4] sm:$0xf0]  ;;  %v557_v27 = vor.u32 %v694_v20, %v554_v21 }
  0x13   :  { %260 = vmatpush.bf16.msra.mxu0 %v585_v10  ;;  %v690_v28 = vld [vmem:[#allocation2 + $0x64] sm:$0xf]  ;;  %v609_v29 = vor.u32 %v709_v26, %v608_v25  ;;  %v707_v30 = vld [vmem:[#allocation2 + $0xec] sm:$0xf]  ;;  %v610_v31 = vld [vmem:[#allocation2 + $0xf8] sm:$0xf0]  ;;  %v537_v39 = vor.u32 %v692_v24, %v536_v22 }
  0x14   :  { %273 = vmatpush.bf16.msra.mxu1 %v589_v11  ;;  %v538_v32 = vld [vmem:[#allocation2 + $0x70] sm:$0xf0]  ;;  %v613_v33 = vor.u32 %v707_v30, %v610_v31  ;;  %v592_v34 = vld [vmem:[#allocation2 + $0xc8] sm:$0xf]  ;;  %v705_v35 = vld [vmem:[#allocation2 + $0xd4] sm:$0xf0] }
  0x15   :  { %285 = vmatpush.bf16.msra.mxu2 %v609_v29  ;;  %v593_v36 = vor.u32 %v705_v35, %v592_v34  ;;  %v703_v37 = vld [vmem:[#allocation2 + $0xcc] sm:$0xf]  ;;  %v594_v38 = vld [vmem:[#allocation2 + $0xd8] sm:$0xf0]  ;;  %v520_v40 = vld [vmem:[#allocation2 + $0x40] sm:$0xf]  ;;  %v541_v44 = vor.u32 %v690_v28, %v538_v32 }
  0x16   :  { %298 = vmatpush.bf16.msra.mxu3 %v613_v33  ;;  %v597_v41 = vor.u32 %v703_v37, %v594_v38  ;;  %v576_v42 = vld [vmem:[#allocation2 + $0xa8] sm:$0xf]  ;;  %v701_v43 = vld [vmem:[#allocation2 + $0xb4] sm:$0xf0]  ;;  %v688_v45 = vld [vmem:[#allocation2 + $0x4c] sm:$0xf0] }
  0x17   :  { %261 = vmatpush.bf16.msra.mxu0 %v569_v16  ;;  %v699_v46 = vld [vmem:[#allocation2 + $0xac] sm:$0xf]  ;;  %v578_v47 = vld [vmem:[#allocation2 + $0xb8] sm:$0xf0]  ;;  %v686_v48 = vld [vmem:[#allocation2 + $0x44] sm:$0xf]  ;;  %v577_v51 = vor.u32 %v701_v43, %v576_v42  ;;  %v521_v52 = vor.u32 %v688_v45, %v520_v40 }
  0x18   :  { %274 = vmatpush.bf16.msra.mxu1 %v573_v17  ;;  %v522_v49 = vld [vmem:[#allocation2 + $0x50] sm:$0xf0]  ;;  %v504_v50 = vld [vmem:[#allocation2 + $0x20] sm:$0xf]  ;;  %v581_v53 = vor.u32 %v699_v46, %v578_v47  ;;  %v560_v54 = vld [vmem:[#allocation2 + $0x88] sm:$0xf] }
  0x19   :  { %286 = vmatpush.bf16.msra.mxu2 %v593_v36  ;;  %v697_v55 = vld [vmem:[#allocation2 + $0x94] sm:$0xf0]  ;;  %v525_v56 = vor.u32 %v686_v48, %v522_v49  ;;  %v684_v57 = vld [vmem:[#allocation2 + $0x2c] sm:$0xf0]  ;;  %v695_v58 = vld [vmem:[#allocation2 + $0x8c] sm:$0xf] }
  0x1a   :  { %299 = vmatpush.bf16.msra.mxu3 %v597_v41  ;;  %v562_v59 = vld [vmem:[#allocation2 + $0x98] sm:$0xf0]  ;;  %v682_v60 = vld [vmem:[#allocation2 + $0x24] sm:$0xf]  ;;  %v506_v61 = vld [vmem:[#allocation2 + $0x30] sm:$0xf0]  ;;  %v561_v62 = vor.u32 %v697_v55, %v560_v54  ;;  %v505_v63 = vor.u32 %v684_v57, %v504_v50 }
  0x1b   :  { %262 = vmatpush.bf16.msra.mxu0 %v553_v23  ;;  %v488_v0 = vld [vmem:[#allocation2] sm:$0xf]  ;;  %v565_v1 = vor.u32 %v695_v58, %v562_v59  ;;  %v544_v2 = vld [vmem:[#allocation2 + $0x68] sm:$0xf]  ;;  %v693_v3 = vld [vmem:[#allocation2 + $0x74] sm:$0xf0]  ;;  %v509_v4 = vor.u32 %v682_v60, %v506_v61 }
  0x1c   :  { %275 = vmatpush.bf16.msra.mxu1 %v557_v27  ;;  %v680_v5 = vld [vmem:[#allocation2 + $0xc] sm:$0xf0]  ;;  %v691_v6 = vld [vmem:[#allocation2 + $0x6c] sm:$0xf]  ;;  %v546_v7 = vld [vmem:[#allocation2 + $0x78] sm:$0xf0]  ;;  %v545_v10 = vor.u32 %v693_v3, %v544_v2 }
  0x1d   :  { %287 = vmatpush.bf16.msra.mxu2 %v577_v51  ;;  %v678_v8 = vld [vmem:[#allocation2 + $0x4] sm:$0xf]  ;;  %v490_v9 = vld [vmem:[#allocation2 + $0x10] sm:$0xf0]  ;;  %v489_v11 = vor.u32 %v680_v5, %v488_v0  ;;  %v549_v13 = vor.u32 %v691_v6, %v546_v7  ;;  %v717_v15 = vld [vmem:[%s875_s3 + $0x38] sm:$0xff] }
  0x1e   :  { %300 = vmatpush.bf16.msra.mxu3 %v581_v53  ;;  %v55_v12 = vld [vmem:[%s872_s0] sm:$0xff]  ;;  %v493_v14 = vor.u32 %v678_v8, %v490_v9  ;;  %v716_v17 = vld [vmem:[%s875_s3 + $0x30] sm:$0xff]  ;;  %v715_v18 = vld [vmem:[%s875_s3 + $0x28] sm:$0xff] }
  0x1f   :  { %263 = vmatpush.bf16.msra.mxu0 %v537_v39  ;;  %v56_v16 = vpack.c.bf16 %v55_v12, %v55_v12  ;;  %v714_v19 = vld [vmem:[%s875_s3 + $0x20] sm:$0xff]  ;;  %v713_v20 = vld [vmem:[%s875_s3 + $0x18] sm:$0xff]  ;;  %v712_v21 = vld [vmem:[%s875_s3 + $0x10] sm:$0xff] }
  0x20   :  { %276 = vmatpush.bf16.msra.mxu1 %v541_v44  ;;  %v528_v22 = vld [vmem:[#allocation2 + $0x48] sm:$0xf]  ;;  %v689_v23 = vld [vmem:[#allocation2 + $0x54] sm:$0xf0]  ;;  %v687_v26 = vld [vmem:[#allocation2 + $0x4c] sm:$0xf] }
  0x21   :  { %288 = vmatpush.bf16.msra.mxu2 %v561_v62  ;;  %v529_v24 = vor.u32 %v689_v23, %v528_v22  ;;  %v711_v25 = vld [vmem:[%s875_s3 + $0x8] sm:$0xff]  ;;  %v530_v27 = vld [vmem:[#allocation2 + $0x58] sm:$0xf0]  ;;  %v685_v30 = vld [vmem:[#allocation2 + $0x34] sm:$0xf0] }
  0x22   :  { %301 = vmatpush.bf16.msra.mxu3 %v565_v1  ;;  %v533_v28 = vor.u32 %v687_v26, %v530_v27  ;;  %v512_v29 = vld [vmem:[#allocation2 + $0x28] sm:$0xf]  ;;  %v710_v32 = vld [vmem:[%s875_s3] sm:$0xff]  ;;  %v683_v33 = vld [vmem:[#allocation2 + $0x2c] sm:$0xf] }
  0x23   :  { %264 = vmatpush.bf16.msra.mxu0 %v521_v52  ;;  %v513_v31 = vor.u32 %v685_v30, %v512_v29  ;;  %v514_v34 = vld [vmem:[#allocation2 + $0x38] sm:$0xf0]  ;;  %v496_v36 = vld [vmem:[#allocation2 + $0x8] sm:$0xf]  ;;  %v681_v37 = vld [vmem:[#allocation2 + $0x14] sm:$0xf0] }
  0x24   :  { %277 = vmatpush.bf16.msra.mxu1 %v525_v56  ;;  %v517_v35 = vor.u32 %v683_v33, %v514_v34  ;;  %v497_v38 = vor.u32 %v681_v37, %v496_v36  ;;  %v679_v39 = vld [vmem:[#allocation2 + $0xc] sm:$0xf]  ;;  %v498_v40 = vld [vmem:[#allocation2 + $0x18] sm:$0xf0]  ;;  %v89_v43 = vld [vmem:[%s874_s2] sm:$0xf] }
  0x25   :  { %289 = vmatpush.bf16.msra.mxu2 %v545_v10  ;;  %v501_v41 = vor.u32 %v679_v39, %v498_v40  ;;  %v725_v42 = vld [vmem:[#allocation4 + $0x38] sm:$0xff]  ;;  %v91_v44 = vperm.slane %v89_v43, 0  ;;  %v92_v45 = vperm.slane %v89_v43, 1  ;;  %v724_v54 = vld [vmem:[#allocation4 + $0x30] sm:$0xff]  ;;  %v723_v55 = vld [vmem:[#allocation4 + $0x28] sm:$0xff]  ;;  %v93_v7 = vperm.slane %v89_v43, 2 }
  0x26   :  { %302 = vmatpush.bf16.msra.mxu3 %v549_v13  ;;  %v722_v56 = vld [vmem:[#allocation4 + $0x20] sm:$0xff]  ;;  %v721_v58 = vld [vmem:[#allocation4 + $0x18] sm:$0xff]  ;;  %v720_v60 = vld [vmem:[#allocation4 + $0x10] sm:$0xff]  ;;  %v94_v8 = vperm.slane %v89_v43, 3 }
  0x27   :  { %265 = vmatpush.bf16.msra.mxu0 %v505_v63  ;;  %v719_v62 = vld [vmem:[#allocation4 + $0x8] sm:$0xff]  ;;  %v718_v0 = vld [vmem:[#allocation4] sm:$0xff] }
  0x28   :  { %278 = vmatpush.bf16.msra.mxu1 %v509_v4 }
  0x29   :  { %290 = vmatpush.bf16.msra.mxu2 %v529_v24 }
  0x2a   :  { %303 = vmatpush.bf16.msra.mxu3 %v533_v28 }
  0x2b   :  { %266 = vmatpush.bf16.msra.mxu0 %v489_v11 }
  0x2c   :  { %279 = vmatpush.bf16.msra.mxu1 %v493_v14 }
  0x2d   :  { %291 = vmatpush.bf16.msra.mxu2 %v513_v31 }
  0x2e   :  { %267 = vmatmul.bf16.vlgmr.msra.gmra.mxu0 %v56_v16  ;;  %304 = vmatpush.bf16.msra.mxu3 %v517_v35 }
  0x2f   :  { %377 = vmatpush.bf16.msrb.mxu0 %v717_v15  ;;  %280 = vmatmul.bf16.vlgmr.msra.gmra.mxu1 %v56_v16  ;;  %v732_v15 = vld [vmem:[%s877_s5] ss:$0 sm:$0xff] }
  0x30   :  { %466 = vmatpush.bf16.msrb.mxu1 %v725_v42 }
  0x31   :  { %292 = vmatpush.bf16.msra.mxu2 %v497_v38 }
  0x32   :  { %305 = vmatpush.bf16.msra.mxu3 %v501_v41 }
  0x33   :  { %378 = vmatpush.bf16.msrb.mxu0 %v716_v17 }
  0x34   :  { %293 = vmatmul.bf16.vlgmr.msra.gmra.mxu2 %v56_v16  ;;  %467 = vmatpush.bf16.msrb.mxu1 %v724_v54 }
  0x35   :  { %306 = vmatmul.bf16.vlgmr.msra.gmra.mxu3 %v56_v16 }
  0x37   :  { %379 = vmatpush.bf16.msrb.mxu0 %v715_v18 }
  0x38   :  { %468 = vmatpush.bf16.msrb.mxu1 %v723_v55 }
  0x3b   :  { %380 = vmatpush.bf16.msrb.mxu0 %v714_v19 }
  0x3c   :  { %469 = vmatpush.bf16.msrb.mxu1 %v722_v56 }
  0x3f   :  { %381 = vmatpush.bf16.msrb.mxu0 %v713_v20 }
  0x40   :  { %470 = vmatpush.bf16.msrb.mxu1 %v721_v58 }
  0x43   :  { %382 = vmatpush.bf16.msrb.mxu0 %v712_v21 }
  0x44   :  { %471 = vmatpush.bf16.msrb.mxu1 %v720_v60 }
  0x47   :  { %383 = vmatpush.bf16.msrb.mxu0 %v711_v25 }
  0x48   :  { %472 = vmatpush.bf16.msrb.mxu1 %v719_v62 }
  0x4b   :  { %384 = vmatpush.bf16.msrb.mxu0 %v710_v32 }
  0x4c   :  { %473 = vmatpush.bf16.msrb.mxu1 %v718_v0 }
  0xab   :  { %v268_v46 = vpop.f32.mrf.mxu0 }
  0xac   :  { %v269_v47 = vadd.f32 %v268_v46, %v91_v44  ;;  %v281_v48 = vpop.f32.mrf.mxu1 }
  0xad   :  { %v282_v49 = vadd.f32 %v281_v48, %v92_v45 }
  0xaf   :  { %v311_v50 = vmul.f32 %v282_v49, %v269_v47 }
  0xb1   :  { %v312_v51 = vpack.c.bf16 %v311_v50, %v311_v50 }
  0xb3   :  { %385 = vmatmul.bf16.vlgmr.msrb.gmra.mxu0 %v312_v51  ;;  %v270_v52 = vpop.f32.mrf.mxu0 }
  0xb4   :  { %v283_v53 = vpop.f32.mrf.mxu1 }
  0xb7   :  { %v294_v57 = vpop.f32.mrf.mxu2 }
  0xb8   :  { %v307_v59 = vpop.f32.mrf.mxu3  ;;  %v295_v9 = vadd.f32 %v294_v57, %v93_v7 }
  0xb9   :  { %v308_v10 = vadd.f32 %v307_v59, %v94_v8 }
  0xbf   :  { %v296_v61 = vpop.f32.mrf.mxu2 }
  0xc0   :  { %v309_v63 = vpop.f32.mrf.mxu3 }
 0x130   :  { %v386_v1 = vpop.f32.mrf.mxu0 }
 0x131   :  { %v390_v2 = vsub.f32 0.0, %v386_v1 }
 0x133   :  { %v391_v3 = vmul.f32 1.442695, %v390_v2 }
 0x135   :  { %733 = vpow2.f32 %v391_v3 }
 0x138   :  { %v388_v4 = vpop.f32.mrf.mxu0 }
 0x13b   :  { %v734_v5 = vpop.eup %733 }
 0x13c   :  { %v393_v6 = vadd.f32 1.0, %v734_v5 }
 0x13e   :  { %735 = vrcp.f32 %v393_v6 }
 0x144   :  { %v736_v11 = vpop.eup %735 }
 0x145   :  { %v395_v12 = vmul.f32 %v736_v11, %v295_v9 }
 0x147   :  { %v396_v13 = vadd.f32 %v395_v12, %v308_v10 }
 0x149   :  { %v397_v14 = vpack.c.bf16 %v396_v13, %v396_v13 }
 0x14b   :  { %474 = vmatmul.bf16.vlgmr.msrb.gmra.mxu1 %v397_v14 }
 0x1c8   :  { %v475_v16 = vpop.f32.mrf.mxu1 }
 0x1c9   :  { %v476_v17 = vadd.f32 %v732_v15, %v475_v16 }
 0x1cb   :  { %479 = vst [vmem:[%s878_s6] sm:$0xff] %v476_v17 }
 0x1d0   :  { %v477_v18 = vpop.f32.mrf.mxu1 }
 0x1d1   :  { %484 = vsyncpa [#allocation3], 1 }
 0x1d2   :  { %485 = vsyncpa [#allocation5], 1 }

</bundles_post_ra>
